<compile_context>
chip_gen: v7x
topology: tpu7x:2x2x1
jax: 0.10.0
libtpu: 0.0.40
codegen_flags: <defaults>
</compile_context>

<pallas_src>
import jax
import jax.numpy as jnp
from jax.experimental import pallas as pl
from jax.experimental.pallas import tpu as pltpu

LANE = 128
SUBLANE = 8
BLK = LANE * SUBLANE  # 1024 elements = one full f32 vreg tile


def mlp_kernel(x_ref, w1_ref, b1_ref, w2_ref, b2_ref, o_ref):
    """Per-tile MLP, all on the VPU.

    x_ref : (3, nb, 8, 128) VMEM  -- batch densified onto sublane x lane tiles
    o_ref : (nb, 8, 128)    VMEM  -- dense lane/sublane store
    w1_ref: (H, 3), b1_ref: (H,), w2_ref: (H,), b2_ref: (1,) -- scalars in SMEM
    """
    x0 = x_ref[0]
    x1 = x_ref[1]
    x2 = x_ref[2]
    H = w1_ref.shape[0]  # static (4)
    # Start the accumulator at the fc2 bias (saves a trailing vector add).
    acc = jnp.full(x0.shape, b2_ref[0], jnp.float32)
    for j in range(H):  # tiny static unrolled loop; K=3 / H=4 skip the MXU
        h = (w1_ref[j, 0] * x0 + w1_ref[j, 1] * x1 + w1_ref[j, 2] * x2
             + b1_ref[j])
        h = jnp.maximum(h, 0.0)          # ReLU; Dropout(p=0) is the identity
        acc = acc + w2_ref[j] * h
    o_ref[...] = acc.astype(o_ref.dtype)


def base_forward(x, w1, b1, w2, b2, *, block_elems=256 * 1024):
    """x: [B, 3] f32 (PyTorch layout). w1: [H, 3] (fc1.weight), b1: [H],
    w2: [H] (fc2.weight flattened), b2: [1]. Returns [B, 1]."""
    B = x.shape[0]
    NB = -(-B // BLK)                    # number of (8,128) batch tiles
    B_pad = NB * BLK

    # Batch tiles per grid step: ~256K elements/step (double-buffered in+out
    # ~ 32*bb bytes = 8 MiB), capped so the grid keeps >= 2-4 iterations so
    # the "parallel" axis can shard across both TensorCores on v7x.
    nb = min(max(1, block_elems // BLK), NB)
    if NB >= 4:
        nb = min(nb, -(-NB // 4))
    elif NB >= 2:
        nb = min(nb, -(-NB // 2))
    grid = (-(-NB // nb),)               # partial boundary block handled by Pallas

    # Feature-major layout so batch rides lanes/sublanes inside the kernel.
    # TODO(synk): the [B,3]->[3,B] transpose is a separate mem-bound XLA op;
    # have the producer emit feature-major x to remove it end-to-end.
    x_t = x.T                                              # [3, B]
    if B_pad != B:
        x_t = jnp.pad(x_t, ((0, 0), (0, B_pad - B)))       # pad to 1024 multiple only
    x_t = x_t.reshape(3, NB, SUBLANE, LANE)                # free row-major reshape

    bytes_per_step = 2 * (3 + 1) * nb * BLK * 4            # double-buffered in+out
    vmem_limit = int(min(32 * 1024 * 1024,
                         max(8 * 1024 * 1024, 2 * bytes_per_step)))

    out_t = pl.pallas_call(
        mlp_kernel,
        out_shape=jax.ShapeDtypeStruct((NB, SUBLANE, LANE), x.dtype),
        grid=grid,
        in_specs=[
            pl.BlockSpec((3, nb, SUBLANE, LANE), lambda i: (0, i, 0, 0)),  # x tile
            pl.BlockSpec(memory_space=pltpu.SMEM),   # w1 scalars
            pl.BlockSpec(memory_space=pltpu.SMEM),   # b1 scalars
            pl.BlockSpec(memory_space=pltpu.SMEM),   # w2 scalars
            pl.BlockSpec(memory_space=pltpu.SMEM),   # b2 scalar
        ],
        out_specs=pl.BlockSpec((nb, SUBLANE, LANE), lambda i: (i, 0, 0)),
        compiler_params=pltpu.CompilerParams(
            dimension_semantics=("parallel",),       # megacore sharding on v7x
            vmem_limit_bytes=vmem_limit),
        cost_estimate=pl.CostEstimate(
            flops=2 * (3 + 1) * w1.shape[0] * B_pad,
            transcendentals=0,
            bytes_accessed=(3 + 1) * x.dtype.itemsize * B_pad),
    )(x_t, w1, b1, w2, b2)

    return out_t.reshape(B_pad)[:B].reshape(B, 1)


def xavier_uniform(key, fan_out, fan_in):
    # matches torch.nn.init.xavier_uniform_ with gain=1 (PyTorch (out, in) shape)
    limit = (6.0 / (fan_in + fan_out)) ** 0.5
    return jax.random.uniform(key, (fan_out, fan_in), jnp.float32, -limit, limit)


def init_params(key, num_neuron=4):
    k1, k2 = jax.random.split(key)
    w1 = xavier_uniform(k1, num_neuron, 3)            # fc1.weight: (H, 3)
    b1 = jnp.zeros((num_neuron,), jnp.float32)        # fc1.bias:   zeros
    w2 = xavier_uniform(k2, 1, num_neuron)[0]         # fc2.weight flattened: (H,)
    b2 = jnp.zeros((1,), jnp.float32)                 # fc2.bias:   zeros
    return w1, b1, w2, b2


def _reference(x, w1, b1, w2, b2):
    return jnp.maximum(x @ w1.T + b1[None, :], 0.0) @ w2[:, None] + b2[None, :]


if __name__ == "__main__":
    key = jax.random.PRNGKey(0)
    k_x, k_x2, k_p = jax.random.split(key, 3)

    num_neuron = 4
    w1, b1, w2, b2 = init_params(k_p, num_neuron)

    # Small batch (single tile, single grid step).
    batch = 8
    x = jax.random.normal(k_x, (batch, 3), jnp.float32)
    out = jax.block_until_ready(base_forward(x, w1, b1, w2, b2))
    ref = _reference(x, w1, b1, w2, b2)
    assert out.shape == (batch, 1)
    assert jnp.allclose(out, ref, atol=1e-5, rtol=1e-5)

    # Larger, non-multiple batch: exercises the multi-step grid and the
    # partial boundary block path.
    batch2 = 2600
    x2 = jax.random.normal(k_x2, (batch2, 3), jnp.float32)
    out2 = jax.block_until_ready(base_forward(x2, w1, b1, w2, b2))
    ref2 = _reference(x2, w1, b1, w2, b2)
    assert out2.shape == (batch2, 1)
    assert jnp.allclose(out2, ref2, atol=1e-5, rtol=1e-5)

    print("KERNEL_OK")
</pallas_src>

<mosaic_0001>
module attributes {stable_mosaic.version = 11 : i64} {
  func.func @mlp_kernel(%arg0: i32, %arg1: memref<3x1x8x128xf32, #tpu.memory_space<vmem>>, %arg2: memref<4x3xf32, #tpu.memory_space<smem>>, %arg3: memref<4xf32, #tpu.memory_space<smem>>, %arg4: memref<4xf32, #tpu.memory_space<smem>>, %arg5: memref<1xf32, #tpu.memory_space<smem>>, %arg6: memref<1x8x128xf32, #tpu.memory_space<vmem>>) attributes {dimension_semantics = [#tpu.dimension_semantics<parallel>], iteration_bounds = array<i64: 1>, scalar_prefetch = 0 : i64, scratch_operands = 0 : i64, tpu.core_type = #tpu.core_type<tc>, window_params = [{transform_indices = @transform_0, window_bounds = array<i64: 3, 1, 8, 128>}, {transform_indices = @transform_1, window_bounds = array<i64: 4, 3>}, {transform_indices = @transform_2, window_bounds = array<i64: 4>}, {transform_indices = @transform_3, window_bounds = array<i64: 4>}, {transform_indices = @transform_4, window_bounds = array<i64: 1>}, {transform_indices = @transform_5, window_bounds = array<i64: 1, 8, 128>}]} {
    %c0 = arith.constant 0 : index
    %c0_0 = arith.constant 0 : index
    %c0_1 = arith.constant 0 : index
    %c0_2 = arith.constant 0 : index
    %0 = vector.load %arg1[%c0, %c0_0, %c0_1, %c0_2] : memref<3x1x8x128xf32, #tpu.memory_space<vmem>>, vector<1x1x8x128xf32>
    %1 = vector.shape_cast %0 : vector<1x1x8x128xf32> to vector<1x8x128xf32>
    %c1 = arith.constant 1 : index
    %c0_3 = arith.constant 0 : index
    %c0_4 = arith.constant 0 : index
    %c0_5 = arith.constant 0 : index
    %2 = vector.load %arg1[%c1, %c0_3, %c0_4, %c0_5] : memref<3x1x8x128xf32, #tpu.memory_space<vmem>>, vector<1x1x8x128xf32>
    %3 = vector.shape_cast %2 : vector<1x1x8x128xf32> to vector<1x8x128xf32>
    %c2 = arith.constant 2 : index
    %c0_6 = arith.constant 0 : index
    %c0_7 = arith.constant 0 : index
    %c0_8 = arith.constant 0 : index
    %4 = vector.load %arg1[%c2, %c0_6, %c0_7, %c0_8] : memref<3x1x8x128xf32, #tpu.memory_space<vmem>>, vector<1x1x8x128xf32>
    %5 = vector.shape_cast %4 : vector<1x1x8x128xf32> to vector<1x8x128xf32>
    %c0_9 = arith.constant 0 : index
    %6 = memref.load %arg5[%c0_9] : memref<1xf32, #tpu.memory_space<smem>>
    %7 = vector.broadcast %6 : f32 to vector<1x8x128xf32>
    %c0_10 = arith.constant 0 : index
    %c0_11 = arith.constant 0 : index
    %8 = memref.load %arg2[%c0_10, %c0_11] : memref<4x3xf32, #tpu.memory_space<smem>>
    %9 = vector.broadcast %8 : f32 to vector<1x8x128xf32>
    %10 = arith.mulf %9, %1 : vector<1x8x128xf32>
    %c0_12 = arith.constant 0 : index
    %c1_13 = arith.constant 1 : index
    %11 = memref.load %arg2[%c0_12, %c1_13] : memref<4x3xf32, #tpu.memory_space<smem>>
    %12 = vector.broadcast %11 : f32 to vector<1x8x128xf32>
    %13 = arith.mulf %12, %3 : vector<1x8x128xf32>
    %14 = arith.addf %10, %13 : vector<1x8x128xf32>
    %c0_14 = arith.constant 0 : index
    %c2_15 = arith.constant 2 : index
    %15 = memref.load %arg2[%c0_14, %c2_15] : memref<4x3xf32, #tpu.memory_space<smem>>
    %16 = vector.broadcast %15 : f32 to vector<1x8x128xf32>
    %17 = arith.mulf %16, %5 : vector<1x8x128xf32>
    %18 = arith.addf %14, %17 : vector<1x8x128xf32>
    %c0_16 = arith.constant 0 : index
    %19 = memref.load %arg3[%c0_16] : memref<4xf32, #tpu.memory_space<smem>>
    %20 = vector.broadcast %19 : f32 to vector<1x8x128xf32>
    %21 = arith.addf %18, %20 : vector<1x8x128xf32>
    %cst = arith.constant 0.000000e+00 : f32
    %22 = vector.broadcast %cst : f32 to vector<1x8x128xf32>
    %23 = arith.maximumf %21, %22 : vector<1x8x128xf32>
    %c0_17 = arith.constant 0 : index
    %24 = memref.load %arg4[%c0_17] : memref<4xf32, #tpu.memory_space<smem>>
    %25 = vector.broadcast %24 : f32 to vector<1x8x128xf32>
    %26 = arith.mulf %25, %23 : vector<1x8x128xf32>
    %27 = arith.addf %7, %26 : vector<1x8x128xf32>
    %c1_18 = arith.constant 1 : index
    %c0_19 = arith.constant 0 : index
    %28 = memref.load %arg2[%c1_18, %c0_19] : memref<4x3xf32, #tpu.memory_space<smem>>
    %29 = vector.broadcast %28 : f32 to vector<1x8x128xf32>
    %30 = arith.mulf %29, %1 : vector<1x8x128xf32>
    %c1_20 = arith.constant 1 : index
    %c1_21 = arith.constant 1 : index
    %31 = memref.load %arg2[%c1_20, %c1_21] : memref<4x3xf32, #tpu.memory_space<smem>>
    %32 = vector.broadcast %31 : f32 to vector<1x8x128xf32>
    %33 = arith.mulf %32, %3 : vector<1x8x128xf32>
    %34 = arith.addf %30, %33 : vector<1x8x128xf32>
    %c1_22 = arith.constant 1 : index
    %c2_23 = arith.constant 2 : index
    %35 = memref.load %arg2[%c1_22, %c2_23] : memref<4x3xf32, #tpu.memory_space<smem>>
    %36 = vector.broadcast %35 : f32 to vector<1x8x128xf32>
    %37 = arith.mulf %36, %5 : vector<1x8x128xf32>
    %38 = arith.addf %34, %37 : vector<1x8x128xf32>
    %c1_24 = arith.constant 1 : index
    %39 = memref.load %arg3[%c1_24] : memref<4xf32, #tpu.memory_space<smem>>
    %40 = vector.broadcast %39 : f32 to vector<1x8x128xf32>
    %41 = arith.addf %38, %40 : vector<1x8x128xf32>
    %cst_25 = arith.constant 0.000000e+00 : f32
    %42 = vector.broadcast %cst_25 : f32 to vector<1x8x128xf32>
    %43 = arith.maximumf %41, %42 : vector<1x8x128xf32>
    %c1_26 = arith.constant 1 : index
    %44 = memref.load %arg4[%c1_26] : memref<4xf32, #tpu.memory_space<smem>>
    %45 = vector.broadcast %44 : f32 to vector<1x8x128xf32>
    %46 = arith.mulf %45, %43 : vector<1x8x128xf32>
    %47 = arith.addf %27, %46 : vector<1x8x128xf32>
    %c2_27 = arith.constant 2 : index
    %c0_28 = arith.constant 0 : index
    %48 = memref.load %arg2[%c2_27, %c0_28] : memref<4x3xf32, #tpu.memory_space<smem>>
    %49 = vector.broadcast %48 : f32 to vector<1x8x128xf32>
    %50 = arith.mulf %49, %1 : vector<1x8x128xf32>
    %c2_29 = arith.constant 2 : index
    %c1_30 = arith.constant 1 : index
    %51 = memref.load %arg2[%c2_29, %c1_30] : memref<4x3xf32, #tpu.memory_space<smem>>
    %52 = vector.broadcast %51 : f32 to vector<1x8x128xf32>
    %53 = arith.mulf %52, %3 : vector<1x8x128xf32>
    %54 = arith.addf %50, %53 : vector<1x8x128xf32>
    %c2_31 = arith.constant 2 : index
    %c2_32 = arith.constant 2 : index
    %55 = memref.load %arg2[%c2_31, %c2_32] : memref<4x3xf32, #tpu.memory_space<smem>>
    %56 = vector.broadcast %55 : f32 to vector<1x8x128xf32>
    %57 = arith.mulf %56, %5 : vector<1x8x128xf32>
    %58 = arith.addf %54, %57 : vector<1x8x128xf32>
    %c2_33 = arith.constant 2 : index
    %59 = memref.load %arg3[%c2_33] : memref<4xf32, #tpu.memory_space<smem>>
    %60 = vector.broadcast %59 : f32 to vector<1x8x128xf32>
    %61 = arith.addf %58, %60 : vector<1x8x128xf32>
    %cst_34 = arith.constant 0.000000e+00 : f32
    %62 = vector.broadcast %cst_34 : f32 to vector<1x8x128xf32>
    %63 = arith.maximumf %61, %62 : vector<1x8x128xf32>
    %c2_35 = arith.constant 2 : index
    %64 = memref.load %arg4[%c2_35] : memref<4xf32, #tpu.memory_space<smem>>
    %65 = vector.broadcast %64 : f32 to vector<1x8x128xf32>
    %66 = arith.mulf %65, %63 : vector<1x8x128xf32>
    %67 = arith.addf %47, %66 : vector<1x8x128xf32>
    %c3 = arith.constant 3 : index
    %c0_36 = arith.constant 0 : index
    %68 = memref.load %arg2[%c3, %c0_36] : memref<4x3xf32, #tpu.memory_space<smem>>
    %69 = vector.broadcast %68 : f32 to vector<1x8x128xf32>
    %70 = arith.mulf %69, %1 : vector<1x8x128xf32>
    %c3_37 = arith.constant 3 : index
    %c1_38 = arith.constant 1 : index
    %71 = memref.load %arg2[%c3_37, %c1_38] : memref<4x3xf32, #tpu.memory_space<smem>>
    %72 = vector.broadcast %71 : f32 to vector<1x8x128xf32>
    %73 = arith.mulf %72, %3 : vector<1x8x128xf32>
    %74 = arith.addf %70, %73 : vector<1x8x128xf32>
    %c3_39 = arith.constant 3 : index
    %c2_40 = arith.constant 2 : index
    %75 = memref.load %arg2[%c3_39, %c2_40] : memref<4x3xf32, #tpu.memory_space<smem>>
    %76 = vector.broadcast %75 : f32 to vector<1x8x128xf32>
    %77 = arith.mulf %76, %5 : vector<1x8x128xf32>
    %78 = arith.addf %74, %77 : vector<1x8x128xf32>
    %c3_41 = arith.constant 3 : index
    %79 = memref.load %arg3[%c3_41] : memref<4xf32, #tpu.memory_space<smem>>
    %80 = vector.broadcast %79 : f32 to vector<1x8x128xf32>
    %81 = arith.addf %78, %80 : vector<1x8x128xf32>
    %cst_42 = arith.constant 0.000000e+00 : f32
    %82 = vector.broadcast %cst_42 : f32 to vector<1x8x128xf32>
    %83 = arith.maximumf %81, %82 : vector<1x8x128xf32>
    %c3_43 = arith.constant 3 : index
    %84 = memref.load %arg4[%c3_43] : memref<4xf32, #tpu.memory_space<smem>>
    %85 = vector.broadcast %84 : f32 to vector<1x8x128xf32>
    %86 = arith.mulf %85, %83 : vector<1x8x128xf32>
    %87 = arith.addf %67, %86 : vector<1x8x128xf32>
    %c0_44 = arith.constant 0 : index
    %c0_45 = arith.constant 0 : index
    %c0_46 = arith.constant 0 : index
    %88 = vector.load %arg6[%c0_44, %c0_45, %c0_46] : memref<1x8x128xf32, #tpu.memory_space<vmem>>, vector<1x8x128xf32>
    tpu.vector_store %arg6[%c0_44, %c0_45, %c0_46], %87 {strides = array<i32>} : memref<1x8x128xf32, #tpu.memory_space<vmem>>, vector<1x8x128xf32>,
    return
  }
  func.func @transform_0(%arg0: i32) -> (i32, i32, i32, i32) {
    %c0_i32 = arith.constant 0 : i32
    %c0_i32_0 = arith.constant 0 : i32
    %c0_i32_1 = arith.constant 0 : i32
    %c0_i32_2 = arith.constant 0 : i32
    return %c0_i32, %arg0, %c0_i32_0, %c0_i32_1 : i32, i32, i32, i32
  }
  func.func @transform_1(%arg0: i32) -> (i32, i32) {
    %c0_i32 = arith.constant 0 : i32
    %c0_i32_0 = arith.constant 0 : i32
    %c0_i32_1 = arith.constant 0 : i32
    return %c0_i32, %c0_i32_0 : i32, i32
  }
  func.func @transform_2(%arg0: i32) -> i32 {
    %c0_i32 = arith.constant 0 : i32
    %c0_i32_0 = arith.constant 0 : i32
    return %c0_i32 : i32
  }
  func.func @transform_3(%arg0: i32) -> i32 {
    %c0_i32 = arith.constant 0 : i32
    %c0_i32_0 = arith.constant 0 : i32
    return %c0_i32 : i32
  }
  func.func @transform_4(%arg0: i32) -> i32 {
    %c0_i32 = arith.constant 0 : i32
    %c0_i32_0 = arith.constant 0 : i32
    return %c0_i32 : i32
  }
  func.func @transform_5(%arg0: i32) -> (i32, i32, i32) {
    %c0_i32 = arith.constant 0 : i32
    %c0_i32_0 = arith.constant 0 : i32
    %c0_i32_1 = arith.constant 0 : i32
    return %arg0, %c0_i32, %c0_i32_0 : i32, i32, i32
  }
}

</mosaic_0001>

<bundles_post_ra>
// kernel: tpu_custom_call.1
= control target key start
LH: loop header
LB: loop body
LE: loop exit
PB: predicated region body
PF: predicated region fallthrough
CT: control target
= control target key end

     0   :  { %11 = vsyncpa [#allocation4], 0  ;;  %s388_s0 = inlined_call_operand.hbm [shape: f32[3,1,8,128], index: 0, kind: input, shape index: {}]   ;;  %s389_s1 = inlined_call_operand.vmem [shape: f32[4,3], index: 1, kind: input, shape index: {}]   ;;  %s390_s2 = inlined_call_operand.vmem [shape: f32[4], index: 2, kind: input, shape index: {}]   ;;  %s391_s3 = inlined_call_operand.vmem [shape: f32[4], index: 3, kind: input, shape index: {}]   ;;  %s392_s4 = inlined_call_operand.<no memory space> [shape: f32[1], index: 4, kind: input, shape index: {}]   ;;  %s393_s5 = inlined_call_operand.hbm [shape: f32[1,8,128], index: 5, kind: output, shape index: {}]  }
   0x1   :  { %12 = vsyncpa [#allocation6], 0 }
   0x2   :  { %13 = vsyncpa [#allocation9], 0  ;;  %s43_s20 = sshll.u32 %s390_s2, 4  ;;  %s44_s20 = int_to_ptr.vmem [resolvable:$true] %s43_s20 }
   0x3   :  { %14 = vsyncpa [#allocation5], 0  ;;  %s197_s21 = scalar_lea.vmem %s44_s20, 16  ;;  %p202_p1 = scmp.lt.s32.totalorder %s44_s20, %s44_s20 }
   0x4   :  { %p198_p0 = scmp.ne.s32.totalorder %s44_s20, %s197_s21  ;;  %p203_p2 = scmp.lt.s32.totalorder %s197_s21, %s197_s21 }
   0x6   :  { %p204_p3 = por %p203_p2, %p202_p1 }
   0x8   :  { %p205_p4 = pnand %p204_p3, %p198_p0 }
   0xa   :  { %208 = shalt.err (!%p205_p4)
}
   0xb   :  { %s285_s22 = smov [#allocation8]   ;;  %s286_s23 = smov [#allocation3]  }
   0xc   :  { %46 = dma.vmem_to_smem %s44_s20, 16, %s285_s22, [#allocation9]  }
   0xd   :  { %s20_s24 = sshll.u32 %s286_s23, 4  ;;  %s209_s27 = scalar_lea.hbm %s388_s0, 384  ;;  %s21_s24 = int_to_ptr.vmem [resolvable:$true] %s20_s24 }
   0xe   :  { %p210_p5 = scmp.ne.s32.totalorder %s388_s0, %s209_s27  ;;  %p213_p6 = scmp.lt.u32.totalorder %s209_s27, %s388_s0 }
  0x10   :  { %p215_p7 = pnand %p213_p6, %p210_p5 }
  0x12   :  { %218 = shalt.err (!%p215_p7)
}
  0x13   :  { %s219_s6 = scalar_lea.vmem %s21_s24, 384  ;;  %p224_p9 = scmp.lt.s32.totalorder %s21_s24, %s21_s24 }
  0x14   :  { %p220_p8 = scmp.ne.s32.totalorder %s21_s24, %s219_s6  ;;  %p225_p10 = scmp.lt.s32.totalorder %s219_s6, %s219_s6 }
  0x16   :  { %p226_p11 = por %p225_p10, %p224_p9 }
  0x18   :  { %p227_p12 = pnand %p226_p11, %p220_p8 }
  0x1a   :  { %230 = shalt.err (!%p227_p12)
}
  0x1b   :  { %s287_s7 = smov 128   ;;  %s288_s8 = smov 8  }
  0x1c   :  { %26 = dma.hbm_to_vmem [thread:$0]  %s388_s0, 384, %s21_s24, [#allocation4], %s287_s7, %s287_s7, %s288_s8  }
  0x1d   :  { %s33_s13 = sshll.u32 %s389_s1, 4  ;;  %s53_s16 = sshll.u32 %s391_s3, 4  ;;  %s34_s13 = int_to_ptr.vmem [resolvable:$true] %s33_s13  ;;  %s54_s16 = int_to_ptr.vmem [resolvable:$true] %s53_s16 }
  0x1e   :  { %s231_s17 = scalar_lea.vmem %s34_s13, 64  ;;  %p236_p0 = scmp.lt.s32.totalorder %s34_s13, %s34_s13 }
  0x1f   :  { %p232_p13 = scmp.ne.s32.totalorder %s34_s13, %s231_s17  ;;  %p237_p1 = scmp.lt.s32.totalorder %s231_s17, %s231_s17 }
  0x21   :  { %p238_p2 = por %p237_p1, %p236_p0 }
  0x23   :  { %p239_p3 = pnand %p238_p2, %p232_p13 }
  0x25   :  { %242 = shalt.err (!%p239_p3)
}
  0x26   :  { %s289_s18 = smov [#allocation7]   ;;  %s243_s0 = scalar_lea.vmem %s54_s16, 16 }
  0x27   :  { %36 = dma.vmem_to_smem %s34_s13, 64, %s289_s18, [#allocation6]  }
  0x28   :  { %p244_p4 = scmp.ne.s32.totalorder %s54_s16, %s243_s0  ;;  %p248_p5 = scmp.lt.s32.totalorder %s54_s16, %s54_s16 }
  0x29   :  { %p249_p6 = scmp.lt.s32.totalorder %s243_s0, %s243_s0 }
  0x2b   :  { %p250_p7 = por %p249_p6, %p248_p5 }
  0x2d   :  { %p251_p8 = pnand %p250_p7, %p244_p4 }
  0x2f   :  { %254 = shalt.err (!%p251_p8)
}
  0x30   :  { %s290_s1 = smov [#allocation10]  }
  0x31   :  { %56 = dma.vmem_to_smem %s54_s16, 16, %s290_s1, [#allocation9]  }
  0x32   :  { %277 = dma.done.wait [#allocation4], 384  }
  0x33   :  { %278 = vsyncadd [#allocation4], 4294966912 }
  0x34   :  { %279 = dma.done.wait [#allocation6], 64  }
  0x35   :  { %280 = vsyncadd [#allocation6], 4294967232 }
  0x36   :  { %281 = dma.done.wait [#allocation9], 32  }
  0x37   :  { %282 = vsyncadd [#allocation9], 4294967264 }
  0x38   :  { %71 = sfence }
  0x39   :  { %s79_s3 = sld [smem:[#allocation7]]  ;;  %s173_s19 = sld [smem:[#allocation7 + $0x1]]  ;;  %v72_v0 = vld [vmem:[#allocation3] sm:$0xff]  ;;  %v74_v1 = vld [vmem:[#allocation3 + $0x8] sm:$0xff]  ;;  %v76_v2 = vld [vmem:[#allocation3 + $0x10] sm:$0xff]  ;;  %v78_v39 = vstv %s392_s4 }
  0x3a   :  { %s174_s20 = sld [smem:[#allocation7 + $0x2]]  ;;  %s343_s21 = sld [smem:[#allocation8]] }
  0x3b   :  { %s345_s22 = sld [smem:[#allocation10]]  ;;  %s176_s24 = sld [smem:[#allocation7 + $0x81]] }
  0x3c   :  { %s175_s23 = sld [smem:[#allocation7 + $0x80]]  ;;  %s177_s25 = sld [smem:[#allocation7 + $0x82]] }
  0x3d   :  { %s347_s26 = sld [smem:[#allocation8 + $0x1]]  ;;  %s180_s27 = sld [smem:[#allocation7 + $0x100]] }
  0x3e   :  { %s181_s28 = sld [smem:[#allocation7 + $0x101]]  ;;  %s349_s2 = sld [smem:[#allocation7 + $0x102]] }
  0x3f   :  { %v80_v3 = vstv %s79_s3  ;;  %v83_v5 = vstv %s173_s19  ;;  %s351_s29 = sld [smem:[#allocation8 + $0x2]]  ;;  %s185_s30 = sld [smem:[#allocation7 + $0x180]] }
  0x40   :  { %v81_v4 = vmul.f32 %v80_v3, %v72_v0  ;;  %v87_v6 = vstv %s174_s20  ;;  %v84_v7 = vmul.f32 %v83_v5, %v74_v1  ;;  %s353_s6 = sld [smem:[#allocation7 + $0x181]]  ;;  %s357_s8 = sld [smem:[#allocation7 + $0x182]]  ;;  %v91_v15 = vstv %s343_s21 }
  0x41   :  { %v88_v8 = vmul.f32 %v87_v6, %v76_v2  ;;  %v102_v10 = vstv %s176_s24  ;;  %s355_s7 = sld [smem:[#allocation10 + $0x1]]  ;;  %v95_v16 = vstv %s345_s22  ;;  %s361_s9 = sld [smem:[#allocation8 + $0x3]] }
  0x42   :  { %v99_v9 = vstv %s175_s23  ;;  %v85_v11 = vadd.f32 %v84_v7, %v81_v4  ;;  %v103_v13 = vmul.f32 %v102_v10, %v74_v1  ;;  %v106_v14 = vstv %s177_s25  ;;  %s363_s10 = sld [smem:[#allocation10 + $0x2]]  ;;  %s189_s11 = sld [smem:[#allocation10 + $0x3]] }
  0x43   :  { %v100_v12 = vmul.f32 %v99_v9, %v72_v0  ;;  %v107_v17 = vmul.f32 %v106_v14, %v76_v2  ;;  %v118_v18 = vstv %s180_s27  ;;  %v110_v23 = vstv %s347_s26  ;;  %s291_s14 = smov [#allocation11]  }
  0x44   :  { %v89_v19 = vadd.f32 %v88_v8, %v85_v11  ;;  %v119_v21 = vmul.f32 %v118_v18, %v72_v0  ;;  %v121_v22 = vstv %s181_s28  ;;  %v125_v25 = vstv %s349_s2  ;;  %s162_s4 = sshll.u32 %s291_s14, 4  ;;  %s163_s4 = int_to_ptr.vmem [resolvable:$true] %s162_s4 }
  0x45   :  { %v104_v20 = vadd.f32 %v103_v13, %v100_v12  ;;  %v122_v24 = vmul.f32 %v121_v22, %v74_v1  ;;  %v129_v26 = vstv %s351_s29  ;;  %v126_v29 = vmul.f32 %v125_v25, %v76_v2  ;;  %s255_s15 = scalar_lea.vmem %s163_s4, 128  ;;  %p260_p10 = scmp.lt.s32.totalorder %s163_s4, %s163_s4 }
  0x46   :  { %v92_v27 = vadd.f32 %v91_v15, %v89_v19  ;;  %v137_v30 = vstv %s185_s30  ;;  %v140_v33 = vstv %s353_s6  ;;  %v144_v34 = vstv %s357_s8  ;;  %p256_p9 = scmp.ne.s32.totalorder %s163_s4, %s255_s15  ;;  %p261_p11 = scmp.lt.s32.totalorder %s255_s15, %s255_s15 }
  0x47   :  { %v108_v28 = vadd.f32 %v107_v17, %v104_v20  ;;  %v123_v31 = vadd.f32 %v122_v24, %v119_v21  ;;  %v138_v32 = vmul.f32 %v137_v30, %v72_v0  ;;  %v141_v37 = vmul.f32 %v140_v33, %v74_v1 }
  0x48   :  { %v93_v35 = vmax.f32 %v92_v27, 0.0  ;;  %v145_v38 = vmul.f32 %v144_v34, %v76_v2  ;;  %v114_v40 = vstv %s355_s7  ;;  %v148_v46 = vstv %s361_s9  ;;  %p262_p12 = por %p261_p11, %p260_p10 }
  0x49   :  { %v111_v36 = vadd.f32 %v110_v23, %v108_v28  ;;  %v127_v41 = vadd.f32 %v126_v29, %v123_v31  ;;  %v142_v44 = vadd.f32 %v141_v37, %v138_v32  ;;  %v133_v49 = vstv %s363_s10 }
  0x4a   :  { %v96_v42 = vmul.f32 %v95_v16, %v93_v35  ;;  %v152_v55 = vstv %s189_s11  ;;  %p263_p13 = pnand %p262_p12, %p256_p9 }
  0x4b   :  { %v112_v43 = vmax.f32 %v111_v36, 0.0  ;;  %v130_v45 = vadd.f32 %v129_v26, %v127_v41  ;;  %v146_v50 = vadd.f32 %v145_v38, %v142_v44 }
  0x4c   :  { %v97_v47 = vadd.f32 %v96_v42, %v78_v39 }
  0x4d   :  { %v115_v48 = vmul.f32 %v114_v40, %v112_v43  ;;  %v131_v51 = vmax.f32 %v130_v45, 0.0  ;;  %v149_v53 = vadd.f32 %v148_v46, %v146_v50 }
  0x4f   :  { %v116_v52 = vadd.f32 %v115_v48, %v97_v47  ;;  %v134_v54 = vmul.f32 %v133_v49, %v131_v51  ;;  %v150_v56 = vmax.f32 %v149_v53, 0.0 }
  0x51   :  { %v135_v57 = vadd.f32 %v134_v54, %v116_v52  ;;  %v153_v58 = vmul.f32 %v152_v55, %v150_v56 }
  0x53   :  { %v154_v59 = vadd.f32 %v153_v58, %v135_v57 }
  0x55   :  { %155 = vst [vmem:[#allocation11] sm:$0xff] %v154_v59 }
  0x56   :  { %266 = shalt.err (!%p263_p13)
}
  0x57   :  { %s267_s18 = scalar_lea.hbm %s393_s5, 128 }
  0x58   :  { %p268_p0 = scmp.ne.s32.totalorder %s393_s5, %s267_s18  ;;  %p271_p1 = scmp.lt.u32.totalorder %s267_s18, %s393_s5 }
  0x5a   :  { %p273_p2 = pnand %p271_p1, %p268_p0 }
  0x5c   :  { %276 = shalt.err (!%p273_p2)
}
  0x5d   :  { %165 = dma.vmem_to_hbm [thread:$0]  %s163_s4, 128, %s393_s5, [#allocation5]  }
  0x5e   :  { %283 = dma.done.wait [#allocation5], 128  }
  0x5f   :  { %284 = vsyncadd [#allocation5], 4294967168 }
  0x60   :  { %169 = vsyncpa [#allocation4], 1 }
  0x61   :  { %170 = vsyncpa [#allocation5], 1 }
  0x62   :  { %171 = vsyncpa [#allocation6], 1 }
  0x63   :  { %172 = vsyncpa [#allocation9], 1 }

</bundles_post_ra>
